<compile_context>
chip_gen: v7x
topology: tpu7x:2x2x1
jax: 0.10.0
libtpu: 0.0.40
codegen_flags: <defaults>
</compile_context>

<pallas_src>
import functools

import jax
import jax.numpy as jnp
from jax import lax
from jax.experimental import pallas as pl
from jax.experimental.pallas import tpu as pltpu


_VMEM_BUDGET = 56 << 20   # fits v7x 64 MiB/TC with headroom; conservative on v5e/v6e
_MAX_TB = 1024            # batch-tile cap (sweepable)


def _cdiv(a, b):
    return -(-a // b)


def _round_up(n, m):
    return _cdiv(n, m) * m


def _matrix_op_kernel(x_ref, m_ref, o_ref):
    """o = x @ matrix.T : contract the last dims of both operands on the MXU."""
    o_ref[...] = lax.dot_general(
        x_ref[...],
        m_ref[...],
        dimension_numbers=(((1,), (1,)), ((), ())),
        preferred_element_type=jnp.float32,
    ).astype(o_ref.dtype)


@functools.partial(jax.jit, static_argnames=("compute_dtype",))
def _matrix_op_apply(x, matrix, compute_dtype=jnp.bfloat16):
    """Apply MatrixOperator over all leading axes of x via a tiled Pallas matmul."""
    out_dim, in_dim = matrix.shape
    extra_shape = x.shape[:-1]
    b = 1
    for d in extra_shape:
        b *= int(d)

    in_bytes = jnp.dtype(compute_dtype).itemsize
    out_bytes = 4                                    # f32 output (operator range dtype)
    sub_align = {4: 8, 2: 16, 1: 32}.get(in_bytes, 8)  # sublane packing of compute dtype

    x_flat = x.reshape((b, in_dim)).astype(compute_dtype)
    m_cast = matrix.astype(compute_dtype)

    # --- N (range) tiling: keep the resident weight slab within ~1/4 budget. ---
    if out_dim * in_dim * in_bytes <= _VMEM_BUDGET // 4:
        tn = out_dim                       # whole weight resident, compact output block
    else:
        tn = max(128, ((_VMEM_BUDGET // 4) // (in_dim * in_bytes)) // 128 * 128)
        tn = min(tn, _round_up(out_dim, 128))
    grid_n = _cdiv(out_dim, tn)
    w_block_bytes = tn * in_dim * in_bytes

    # Single-buffer a whole-resident weight only when it is big enough to matter.
    single_buffer_weight = (grid_n == 1) and (w_block_bytes >= (4 << 20))
    n_w_bufs = 1 if single_buffer_weight else 2

    # --- B (batch) tiling: fill remaining VMEM, balance tiles, and keep >= 2
    # tiles when B allows so the "parallel" axis can shard across v7x's 2 TCs.
    slack = 2 << 20
    rem = max(0, _VMEM_BUDGET - n_w_bufs * w_block_bytes - slack)
    per_row = 2 * (in_dim * in_bytes + tn * out_bytes)   # double-buffered x + out row
    tb_cap = min(_MAX_TB, max(sub_align, (rem // max(per_row, 1)) // sub_align * sub_align))
    num_b_tiles = max(2 if b > sub_align else 1, _cdiv(b, tb_cap))
    tb = min(tb_cap, _round_up(_cdiv(b, num_b_tiles), sub_align))
    grid_b = _cdiv(b, tb)

    # Actual VMEM requirement (double-buffered x/out tiles + weight buffers).
    vmem_need = (n_w_bufs * w_block_bytes
                 + 2 * tb * in_dim * in_bytes
                 + 2 * tb * tn * out_bytes
                 + slack)
    vmem_limit = int(max(32 << 20, vmem_need))

    cost = pl.CostEstimate(
        flops=2 * b * in_dim * out_dim,
        transcendentals=0,
        bytes_accessed=(b * in_dim * in_bytes
                        + out_dim * in_dim * in_bytes
                        + b * out_dim * out_bytes),
    )

    w_spec_kwargs = {}
    if single_buffer_weight:
        w_spec_kwargs["pipeline_mode"] = pl.Buffered(1)

    out_flat = pl.pallas_call(
        _matrix_op_kernel,
        out_shape=jax.ShapeDtypeStruct((b, out_dim), jnp.float32),
        grid_spec=pltpu.PrefetchScalarGridSpec(
            num_scalar_prefetch=0,
            # Batch axis innermost: x streams while the weight block stays put.
            grid=(grid_n, grid_b),
            in_specs=[
                pl.BlockSpec((tb, in_dim), lambda j, i: (i, 0)),
                pl.BlockSpec((tn, in_dim), lambda j, i: (j, 0), **w_spec_kwargs),
            ],
            out_specs=pl.BlockSpec((tb, tn), lambda j, i: (i, j)),
        ),
        compiler_params=pltpu.CompilerParams(
            dimension_semantics=("parallel", "parallel"),
            vmem_limit_bytes=vmem_limit,
            allow_input_fusion=[True, True],   # fuse reshape/cast into kernel inputs
        ),
        cost_estimate=cost,
    )(x_flat, m_cast)

    return out_flat.reshape(extra_shape + (out_dim,))


def operator_module_forward(x, matrix, compute_dtype=jnp.bfloat16):
    """Forward pass of OperatorModule(MatrixOperator(matrix)).

    Parameters
    ----------
    x : array of shape extra_shape + (in_dim,), len(extra_shape) >= 1.
    matrix : array of shape (out_dim, in_dim).
    compute_dtype : MXU input dtype (bf16 default; jnp.float32 escape hatch).

    Returns
    -------
    out : array of shape extra_shape + (out_dim,), float32 (operator range dtype).
    """
    out_dim, in_dim = matrix.shape
    in_shape = tuple(x.shape)
    op_in_shape = (in_dim,)
    op_in_ndim = len(op_in_shape)

    # Same shape validation as OperatorModule.forward.
    if len(in_shape) <= op_in_ndim or in_shape[-op_in_ndim:] != op_in_shape:
        raise ValueError(
            'input tensor has wrong shape: expected (N, *, {}), got {}'.format(
                in_dim, in_shape))

    return _matrix_op_apply(x, matrix, compute_dtype=compute_dtype)


if __name__ == "__main__":
    key = jax.random.PRNGKey(0)
    k_mat, k_x, k_x2 = jax.random.split(key, 3)

    # Synthetic ODL MatrixOperator: domain (in_dim,) -> range (out_dim,)
    in_dim, out_dim = 32, 16
    matrix = jax.random.normal(k_mat, (out_dim, in_dim), dtype=jnp.float32)

    # Reference with the same bf16-rounded operands (f32 accumulation).
    def ref_fn(xx):
        return jnp.einsum(
            "...i,oi->...o",
            xx.astype(jnp.bfloat16).astype(jnp.float32),
            matrix.astype(jnp.bfloat16).astype(jnp.float32))

    # Input with extra (batch, channel) axes left of the operator domain axis.
    x = jax.random.normal(k_x, (2, 4, in_dim), dtype=jnp.float32)
    out = jax.block_until_ready(operator_module_forward(x, matrix))
    assert out.shape == (2, 4, out_dim)
    assert jnp.allclose(out, ref_fn(x), atol=2e-3, rtol=2e-3)
    # Loose sanity check against the exact f32 operator (bf16 precision trade-off).
    assert jnp.allclose(out, jnp.einsum("...i,oi->...o", x, matrix),
                        atol=0.25, rtol=0.05)

    # Second case: batch size not a multiple of the sublane alignment / tile
    # (exercises the masked boundary tile — no HBM padding pass anywhere).
    x2 = jax.random.normal(k_x2, (3, 5, in_dim), dtype=jnp.float32)
    out2 = jax.block_until_ready(operator_module_forward(x2, matrix))
    assert out2.shape == (3, 5, out_dim)
    assert jnp.allclose(out2, ref_fn(x2), atol=2e-3, rtol=2e-3)

    print("KERNEL_OK")
</pallas_src>

<mosaic_0001>
module attributes {stable_mosaic.version = 11 : i64} {
  func.func @_matrix_op_kernel(%arg0: i32, %arg1: i32, %arg2: memref<16x32xbf16, #tpu.memory_space<vmem>>, %arg3: memref<16x32xbf16, #tpu.memory_space<vmem>>, %arg4: memref<16x16xf32, #tpu.memory_space<vmem>>) attributes {dimension_semantics = [#tpu.dimension_semantics<parallel>, #tpu.dimension_semantics<parallel>], iteration_bounds = array<i64: 1, 1>, scalar_prefetch = 0 : i64, scratch_operands = 0 : i64, tpu.core_type = #tpu.core_type<tc>, window_params = [{transform_indices = @transform_0, window_bounds = array<i64: 16, 32>}, {transform_indices = @transform_1, window_bounds = array<i64: 16, 32>}, {transform_indices = @transform_2, window_bounds = array<i64: 16, 16>}]} {
    %c0 = arith.constant 0 : index
    %c0_0 = arith.constant 0 : index
    %0 = vector.load %arg2[%c0, %c0_0] : memref<16x32xbf16, #tpu.memory_space<vmem>>, vector<16x32xbf16>
    %c0_1 = arith.constant 0 : index
    %c0_2 = arith.constant 0 : index
    %1 = vector.load %arg3[%c0_1, %c0_2] : memref<16x32xbf16, #tpu.memory_space<vmem>>, vector<16x32xbf16>
    %cst = arith.constant dense<0.000000e+00> : vector<16x16xf32>
    %2 = tpu.matmul %0, %1, %cst {dimension_numbers = #tpu.dot_dimension_numbers<[1], [1], [0], [0], [0, 0, 1, 0], [], []>} : vector<16x32xbf16>, vector<16x32xbf16>, vector<16x16xf32> -> vector<16x16xf32>
    %c0_3 = arith.constant 0 : index
    %c0_4 = arith.constant 0 : index
    %3 = vector.load %arg4[%c0_3, %c0_4] : memref<16x16xf32, #tpu.memory_space<vmem>>, vector<16x16xf32>
    tpu.vector_store %arg4[%c0_3, %c0_4], %2 {strides = array<i32>} : memref<16x16xf32, #tpu.memory_space<vmem>>, vector<16x16xf32>,
    return
  }
  func.func @transform_0(%arg0: i32, %arg1: i32) -> (i32, i32) {
    %c0_i32 = arith.constant 0 : i32
    %c0_i32_0 = arith.constant 0 : i32
    return %arg1, %c0_i32 : i32, i32
  }
  func.func @transform_1(%arg0: i32, %arg1: i32) -> (i32, i32) {
    %c0_i32 = arith.constant 0 : i32
    %c0_i32_0 = arith.constant 0 : i32
    return %arg0, %c0_i32 : i32, i32
  }
  func.func @transform_2(%arg0: i32, %arg1: i32) -> (i32, i32) {
    %c0_i32 = arith.constant 0 : i32
    return %arg1, %arg0 : i32, i32
  }
}

</mosaic_0001>

<bundles_post_ra>
// kernel: _matrix_op_apply.2
= control target key start
LH: loop header
LB: loop body
LE: loop exit
PB: predicated region body
PF: predicated region fallthrough
CT: control target
= control target key end

     0   :  { %7 = vsyncpa [#allocation3], 0  ;;  %v158_v2 = vmov 0.0   ;;  %vm159_vm0 = vmmov 0   ;;  %vm43_vm1 = vcmask 261120   ;;  %vm91_vm2 = vcmask 130048   ;;  %s199_s0 = inlined_call_operand.vmem [shape: bf16[8,32], index: 0, kind: input, shape index: {}]   ;;  %s200_s1 = inlined_call_operand.vmem [shape: f32[16,32], index: 1, kind: input, shape index: {}]   ;;  %s201_s2 = inlined_call_operand.hbm [shape: f32[8,16], index: 2, kind: output, shape index: {}]  }
   0x1   :  { %v12_v0 = vld [vmem:[%s200_s1] sm:$0xff]  ;;  %v110_v1 = vld [vmem:[%s200_s1 + $0x8] sm:$0xff]  ;;  %121 = vmatprep.subr.bf16.mxu0 %v158_v2  ;;  %123 = vmatprep.mubr.msk.bf16.mxu0 %vm159_vm0, %v158_v2 }
   0x2   :  { %v117_v3 = vpack.c.bf16 %v110_v1, %v12_v0  ;;  %v133_v6 = vld [vmem:[%s199_s0] sm:$0xff]  }
   0x4   :  { %118 = vst [vmem:[#allocation4] sm:$0xff] %v117_v3  }
   0xb   :  { %v132_v4 = vld [vmem:[#allocation4] sm:$0xff]  }
   0xc   :  { %v48_v5 = vsel %vm43_vm1, %v132_v4, 0 }
   0xd   :  { %122 = vmatpush3.bf16.xpose.msra.mxu0 %v48_v5 }
  0x14   :  { %124 = vmatmul.mubr.msk.bf16.vlgmr.msra.gmra.mrb[0].mxu0 %vm43_vm1, %v133_v6 }
  0xe7   :  { %v84_v7 = vpop.f32.mrb[0].mxu0 }
  0xe8   :  { %92 = vst.msk [vmem:[#allocation2] sm:$0xff] %vm91_vm2, %v84_v7  ;;  %v125_v8 = vpop.f32.mrb[1].mxu0 }
  0xe9   :  { %v87_v9 = vpop.f32.mrb[2].mxu0 }
  0xea   :  { %93 = vst.msk [vmem:[#allocation2 + $0x8] sm:$0xff] %vm91_vm2, %v87_v9  ;;  %v126_v10 = vpop.f32.mrb[3].mxu0 }
  0xeb   :  { %98 = vsyncadd [#allocation3], 128  ;;  %s160_s1 = smov [#allocation2]  }
  0xec   :  { %s99_s15 = sshll.u32 %s160_s1, 4  ;;  %s100_s15 = int_to_ptr.vmem [resolvable:$true] %s99_s15 }
  0xed   :  { %s134_s16 = scalar_lea.vmem %s100_s15, 128  ;;  %s138_s17 = scalar_lea.vmem %s100_s15, 256 }
  0xee   :  { %p135_p0 = scmp.ne.s32.totalorder %s100_s15, %s134_s16  ;;  %p139_p1 = scmp.lt.s32.totalorder %s100_s15, %s100_s15 }
  0xef   :  { %p140_p2 = scmp.lt.s32.totalorder %s138_s17, %s134_s16 }
  0xf1   :  { %p141_p3 = por %p140_p2, %p139_p1 }
  0xf3   :  { %p142_p4 = pnand %p141_p3, %p135_p0 }
  0xf5   :  { %145 = shalt.err (!%p142_p4)
}
  0xf6   :  { %s146_s19 = scalar_lea.hbm %s201_s2, 128 }
  0xf7   :  { %p147_p5 = scmp.ne.s32.totalorder %s201_s2, %s146_s19  ;;  %p150_p6 = scmp.lt.u32.totalorder %s146_s19, %s201_s2 }
  0xf9   :  { %p152_p7 = pnand %p150_p6, %p147_p5 }
  0xfb   :  { %155 = shalt.err (!%p152_p7)
}
  0xfc   :  { %s161_s24 = smov 128   ;;  %s162_s25 = smov 8  }
  0xfd   :  { %105 = dma.vmem_to_hbm [thread:$0]  %s100_s15, 128, %s201_s2, [#allocation3], %s161_s24, %s161_s24, %s162_s25  }
  0xfe   :  { %156 = dma.done.wait [#allocation3], 256  }
  0xff   :  { %157 = vsyncadd [#allocation3], 4294967040 }
 0x100   :  { %109 = vsyncpa [#allocation3], 1 }

</bundles_post_ra>
